<compile_context>
chip_gen: v5e
topology: v5e:2x2
jax: 0.10.0
libtpu: 0.0.40
codegen_flags: <defaults>
</compile_context>

<pallas_src>
import functools

import jax
import jax.numpy as jnp
from jax.experimental import pallas as pl
from jax.experimental.pallas import tpu as pltpu


def _cin_kernel(p_ref, x_ref, o_ref, *, eps, inv_n):
    # p_ref: f32[R, 2]   col 0 = conditional shift (mean_cond),
    #                    col 1 = conditional scale (std_mean)
    # x_ref, o_ref:      [R, HW]   (R flattened (b, c) planes, full spatial row)
    x = x_ref[...].astype(jnp.float32)                        # (R, HW)

    # Two-pass centered statistics (matches torch.var(unbiased=False)).
    mean = jnp.sum(x, axis=-1, keepdims=True) * inv_n         # (R, 1)
    xc = x - mean
    var = jnp.sum(xc * xc, axis=-1, keepdims=True) * inv_n    # (R, 1)
    inv = jax.lax.rsqrt(var + eps)                            # EUP, ~free

    p = p_ref[...].astype(jnp.float32)                        # (R, 2)
    shift = p[:, 0:1]
    scale = p[:, 1:2]

    # y = (x - mean) * (inv * scale) + shift
    o_ref[...] = (xc * (inv * scale) + shift).astype(o_ref.dtype)


def conditional_instance_norm(x, mu_std, eps=1e-5):
    """x: (B, C, H, W), mu_std: (B, 2*C) -> (B, C, H, W)."""
    B, C, H, W = x.shape
    size = mu_std.shape[1] // 2
    assert size == C, "mu_std second dim must be 2*C"

    HW = H * W
    rows = B * C

    # Pack per-row conditional params as a single (rows, 2) f32 array.
    mu = mu_std.astype(jnp.float32)
    params = jnp.stack(
        [mu[:, :C].reshape(rows), mu[:, C:].reshape(rows)], axis=-1)  # (rows,2)

    # Free reshape (contiguous view) — no extra HBM pass.
    x2 = x.reshape(rows, HW)

    itemsize = jnp.dtype(x.dtype).itemsize
    # ~4 MiB of input-dtype bytes per x block: big enough to sit near the HBM
    # roofline knee, small enough that 2x(in+out) buffers + f32 temporaries fit
    # within the raised scoped-VMEM limit on v5e/v6e/v7x.
    tile_bytes = 4 * 1024 * 1024
    row_bytes = max(1, HW * itemsize)
    r_budget = max(8, ((tile_bytes // row_bytes) // 8) * 8)
    rows8 = ((rows + 7) // 8) * 8
    R = min(r_budget, rows8)
    # v7x megacore: prefer >= 2 grid steps when the row count allows, so the
    # "parallel" grid axis splits across both TensorCores.
    if rows > 8 and pl.cdiv(rows, R) < 2:
        R = max(8, ((pl.cdiv(rows, 2) + 7) // 8) * 8)

    grid = (pl.cdiv(rows, R),)

    kernel = functools.partial(_cin_kernel, eps=float(eps), inv_n=1.0 / HW)

    cost = pl.CostEstimate(
        flops=6 * rows * HW,
        transcendentals=rows,
        bytes_accessed=2 * rows * HW * itemsize,
    )

    out = pl.pallas_call(
        kernel,
        out_shape=jax.ShapeDtypeStruct((rows, HW), x.dtype),
        grid=grid,
        in_specs=[
            pl.BlockSpec((R, 2), lambda i: (i, 0)),     # packed (shift, scale)
            pl.BlockSpec((R, HW), lambda i: (i, 0)),    # x row block, full spatial
        ],
        out_specs=pl.BlockSpec((R, HW), lambda i: (i, 0)),
        compiler_params=pltpu.CompilerParams(
            dimension_semantics=("parallel",),
            vmem_limit_bytes=48 * 1024 * 1024,
        ),
        cost_estimate=cost,
    )(params, x2)

    return out.reshape(B, C, H, W)


if __name__ == "__main__":
    key = jax.random.PRNGKey(0)
    kx, km = jax.random.split(key)

    B, C, H, W = 2, 4, 16, 16
    x = jax.random.normal(kx, (B, C, H, W), dtype=jnp.float32)
    mu_std = jax.random.normal(km, (B, 2 * C), dtype=jnp.float32)

    out = conditional_instance_norm(x, mu_std)
    out = jax.block_until_ready(out)

    # Plain-JAX reference reproducing the PyTorch forward exactly.
    mean = jnp.mean(x, axis=(-2, -1), keepdims=True)
    var = jnp.mean((x - mean) ** 2, axis=(-2, -1), keepdims=True)  # unbiased=False
    x_norm = (x - mean) / jnp.sqrt(var + 1e-5)
    mean_cond = mu_std[:, :C].reshape(B, C, 1, 1)
    std_mean = mu_std[:, C:].reshape(B, C, 1, 1)
    ref = x_norm * std_mean + mean_cond

    assert out.shape == ref.shape and out.dtype == ref.dtype
    assert jnp.allclose(out, ref, atol=1e-5, rtol=1e-5), "mismatch vs reference"
    print("KERNEL_OK")
</pallas_src>

<mosaic_0001>
module attributes {stable_mosaic.version = 11 : i64} {
  func.func @_cin_kernel(%arg0: i32, %arg1: memref<8x2xf32, #tpu.memory_space<vmem>>, %arg2: memref<8x256xf32, #tpu.memory_space<vmem>>, %arg3: memref<8x256xf32, #tpu.memory_space<vmem>>) attributes {dimension_semantics = [#tpu.dimension_semantics<parallel>], iteration_bounds = array<i64: 1>, scalar_prefetch = 0 : i64, scratch_operands = 0 : i64, tpu.core_type = #tpu.core_type<tc>, window_params = [{transform_indices = @transform_0, window_bounds = array<i64: 8, 2>}, {transform_indices = @transform_1, window_bounds = array<i64: 8, 256>}, {transform_indices = @transform_2, window_bounds = array<i64: 8, 256>}]} {
    %c0 = arith.constant 0 : index
    %c0_0 = arith.constant 0 : index
    %0 = vector.load %arg2[%c0, %c0_0] : memref<8x256xf32, #tpu.memory_space<vmem>>, vector<8x256xf32>
    %cst = arith.constant dense<0.000000e+00> : vector<8xf32>
    %1 = vector.multi_reduction <add>, %0, %cst [1] : vector<8x256xf32> to vector<8xf32>
    %2 = vector.shape_cast %1 : vector<8xf32> to vector<8x1xf32>
    %cst_1 = arith.constant 3.906250e-03 : f32
    %3 = vector.broadcast %cst_1 : f32 to vector<8x1xf32>
    %4 = arith.mulf %2, %3 : vector<8x1xf32>
    %5 = vector.broadcast %4 : vector<8x1xf32> to vector<8x256xf32>
    %6 = arith.subf %0, %5 : vector<8x256xf32>
    %7 = arith.mulf %6, %6 : vector<8x256xf32>
    %cst_2 = arith.constant dense<0.000000e+00> : vector<8xf32>
    %8 = vector.multi_reduction <add>, %7, %cst_2 [1] : vector<8x256xf32> to vector<8xf32>
    %9 = vector.shape_cast %8 : vector<8xf32> to vector<8x1xf32>
    %cst_3 = arith.constant 3.906250e-03 : f32
    %10 = vector.broadcast %cst_3 : f32 to vector<8x1xf32>
    %11 = arith.mulf %9, %10 : vector<8x1xf32>
    %cst_4 = arith.constant 9.99999974E-6 : f32
    %12 = vector.broadcast %cst_4 : f32 to vector<8x1xf32>
    %13 = arith.addf %11, %12 : vector<8x1xf32>
    %14 = math.rsqrt %13 : vector<8x1xf32>
    %c0_5 = arith.constant 0 : index
    %c0_6 = arith.constant 0 : index
    %15 = vector.load %arg1[%c0_5, %c0_6] : memref<8x2xf32, #tpu.memory_space<vmem>>, vector<8x2xf32>
    %16 = vector.extract_strided_slice %15 {offsets = [0, 0], sizes = [8, 1], strides = [1, 1]} : vector<8x2xf32> to vector<8x1xf32>
    %17 = vector.extract_strided_slice %15 {offsets = [0, 1], sizes = [8, 1], strides = [1, 1]} : vector<8x2xf32> to vector<8x1xf32>
    %18 = arith.mulf %14, %17 : vector<8x1xf32>
    %19 = vector.broadcast %18 : vector<8x1xf32> to vector<8x256xf32>
    %20 = arith.mulf %6, %19 : vector<8x256xf32>
    %21 = vector.broadcast %16 : vector<8x1xf32> to vector<8x256xf32>
    %22 = arith.addf %20, %21 : vector<8x256xf32>
    %c0_7 = arith.constant 0 : index
    %c0_8 = arith.constant 0 : index
    %23 = vector.load %arg3[%c0_7, %c0_8] : memref<8x256xf32, #tpu.memory_space<vmem>>, vector<8x256xf32>
    tpu.vector_store %arg3[%c0_7, %c0_8], %22 {strides = array<i32>} : memref<8x256xf32, #tpu.memory_space<vmem>>, vector<8x256xf32>,
    return
  }
  func.func @transform_0(%arg0: i32) -> (i32, i32) {
    %c0_i32 = arith.constant 0 : i32
    %c0_i32_0 = arith.constant 0 : i32
    return %arg0, %c0_i32 : i32, i32
  }
  func.func @transform_1(%arg0: i32) -> (i32, i32) {
    %c0_i32 = arith.constant 0 : i32
    %c0_i32_0 = arith.constant 0 : i32
    return %arg0, %c0_i32 : i32, i32
  }
  func.func @transform_2(%arg0: i32) -> (i32, i32) {
    %c0_i32 = arith.constant 0 : i32
    %c0_i32_0 = arith.constant 0 : i32
    return %arg0, %c0_i32 : i32, i32
  }
}

</mosaic_0001>

<bundles_post_ra>
// kernel: tpu_custom_call.1
= control target key start
LH: loop header
LB: loop body
LE: loop exit
PB: predicated region body
PF: predicated region fallthrough
CT: control target
= control target key end

     0   :  { %7 = vsyncpa [#allocation3], 0  ;;  %s175_s0 = inlined_call_operand.vmem [shape: f32[8,2], index: 0, kind: input, shape index: {}]   ;;  %s176_s1 = inlined_call_operand.hbm [shape: f32[8,256], index: 1, kind: input, shape index: {}]   ;;  %s177_s2 = inlined_call_operand.hbm [shape: f32[8,256], index: 2, kind: output, shape index: {}]  }
   0x1   :  { %8 = vsyncpa [#allocation4], 0  ;;  %s16_s11 = sshll.u32 %s176_s1, 4  ;;  %s147_s12 = smov [#allocation2]   ;;  %s17_s11 = int_to_ptr.hbm [resolvable:$true] %s16_s11 }
   0x2   :  { %s18_s13 = sshll.u32 %s147_s12, 4  ;;  %s19_s13 = int_to_ptr.vmem [resolvable:$true] %s18_s13 }
   0x3   :  { %21 = dma.hbm_to_vmem [thread:$0]  %s17_s11, 256, %s19_s13, [#allocation3]  }
   0x4   :  { %143 = dma.done.wait [#allocation3], 256  }
   0x5   :  { %144 = vsyncadd [#allocation3], 4294967040  ;;  %v26_v0 = vld [vmem:[#allocation2] sm:$0xff]  ;;  %v27_v1 = vld [vmem:[#allocation2 + $0x8] sm:$0xff]  ;;  %v148_v10 = vmov 1   ;;  %v149_v11 = vmov 0  }
   0x6   :  { %v28_v2 = vadd.f32 %v27_v1, %v26_v0  ;;  %90 = vset.pattern.permute.xlu1 %v148_v10  ;;  %92 = vset.pattern.permute.xlu0 %v149_v11  ;;  %v51_v21 = vld [vmem:[%s175_s0] sm:$0xff]  ;;  %s150_s15 = smov [#allocation5]   ;;  %s76_s19 = sshll.u32 %s177_s2, 4  ;;  %s77_s19 = int_to_ptr.hbm [resolvable:$true] %s76_s19 }
   0x7   :  { %s74_s16 = sshll.u32 %s150_s15, 4  ;;  %s75_s16 = int_to_ptr.vmem [resolvable:$true] %s74_s16 }
   0x8   :  { %29 = vadd.xlane.f32.xlu0 %v28_v2 }
  0x7b   :  { %v30_v3 = vpop.xlane.xlu0 %29 }
  0x7c   :  { %v31_v4 = vmul.f32 0.00390625, %v30_v3 }
  0x7e   :  { %v32_v5 = vsub.f32 %v26_v0, %v31_v4  ;;  %v33_v6 = vsub.f32 %v27_v1, %v31_v4 }
  0x80   :  { %v34_v7 = vmul.f32 %v32_v5, %v32_v5  ;;  %v35_v8 = vmul.f32 %v33_v6, %v33_v6 }
  0x82   :  { %v36_v9 = vadd.f32 %v35_v8, %v34_v7 }
  0x84   :  { %37 = vadd.xlane.f32.xlu0 %v36_v9 }
  0xf7   :  { %v38_v12 = vpop.xlane.xlu0 %37 }
  0xf8   :  { %v39_v13 = vmul.f32 0.00390625, %v38_v12 }
  0xfa   :  { %v40_v14 = vadd.f32 1e-05, %v39_v13 }
  0xfc   :  { %93 = vrsqrt.f32 %v40_v14  ;;  %vm47_vm1 = vweird.f32 %v40_v14 }
 0x102   :  { %v94_v15 = vpop.eup %93 }
 0x103   :  { %v42_v16 = vmul.f32 %v94_v15, %v40_v14  ;;  %vm48_vm0 = vweird.f32 %v94_v15 }
 0x104   :  { %vm49_vm2 = vmor %vm47_vm1, %vm48_vm0 }
 0x105   :  { %v43_v17 = vmul.f32 %v94_v15, %v42_v16 }
 0x107   :  { %v44_v18 = vmul.f32 0.5, %v43_v17 }
 0x109   :  { %v45_v19 = vsub.f32 1.5, %v44_v18 }
 0x10b   :  { %v46_v20 = vmul.f32 %v94_v15, %v45_v19 }
 0x10d   :  { %v50_v22 = vsel %vm49_vm2, %v94_v15, %v46_v20 }
 0x10e   :  { %v52_v23 = vmul.f32 %v51_v21, %v50_v22 }
 0x110   :  { %55 = vperm.xlu1 %90, %v52_v23  }
 0x118   :  { %91 = vset.pattern.permute.xlu1 %v149_v11 }
 0x119   :  { %62 = vperm.xlu1 %91, %v51_v21  }
 0x182   :  { %v56_v24 = vpop.permute.xlu1 %55 }
 0x183   :  { %v58_v25 = vmul.f32 %v56_v24, %v32_v5  ;;  %v59_v26 = vmul.f32 %v56_v24, %v33_v6 }
 0x18b   :  { %v63_v27 = vpop.permute.xlu1 %62 }
 0x18c   :  { %v65_v28 = vadd.f32 %v63_v27, %v58_v25  ;;  %v66_v29 = vadd.f32 %v63_v27, %v59_v26 }
 0x18e   :  { %67 = vst [vmem:[#allocation5] sm:$0xff] %v65_v28 }
 0x18f   :  { %68 = vst [vmem:[#allocation5 + $0x8] sm:$0xff] %v66_v29 }
 0x190   :  { %79 = dma.vmem_to_hbm [thread:$0]  %s75_s16, 256, %s77_s19, [#allocation4]  }
 0x191   :  { %145 = dma.done.wait [#allocation4], 256  }
 0x192   :  { %146 = vsyncadd [#allocation4], 4294967040 }
 0x193   :  { %84 = vsyncpa [#allocation3], 1 }
 0x194   :  { %85 = vsyncpa [#allocation4], 1 }

</bundles_post_ra>
